<compile_context>
chip_gen: v5e
topology: v5e:2x2
jax: 0.10.0
libtpu: 0.0.40
codegen_flags: <defaults>
</compile_context>

<pallas_src>
import functools

import jax
import jax.numpy as jnp
from jax import lax
from jax.experimental import pallas as pl
from jax.experimental.pallas import tpu as pltpu

LOG_EPSILON = 1e-05
_LANES = 128
_STREAM_VMEM_BUDGET = 24 * 1024 * 1024   # double-buffered streamed bytes
_VMEM_LIMIT_BYTES = 48 * 1024 * 1024     # safe on v5e/v6e (128 MiB) and v7x (64 MiB)


def _round_up(v, m):
    return ((v + m - 1) // m) * m


def _role_kernel(x_ref, e_ref, t_ref, loss_ref, part_ref, *, tb, valid_rows):
    """Elementwise ROLE loss on one (tb, L) tile + per-tile partial sums."""
    x = x_ref[...].astype(jnp.float32)
    est = e_ref[...].astype(jnp.float32)
    tgt = t_ref[...].astype(jnp.float32)

    sig = jax.nn.sigmoid(x)

    # Each transcendental computed exactly once and reused (single EUP slot).
    nls = -jnp.log(sig + LOG_EPSILON)            # -log(sigmoid(x) + eps)
    nl1s = -jnp.log(1.0 - sig + LOG_EPSILON)     # -log(1 - sigmoid(x) + eps)
    nle = -jnp.log(est + LOG_EPSILON)            # -log(est + eps)
    nl1e = -jnp.log(1.0 - est + LOG_EPSILON)     # -log(1 - est + eps)

    pos = (tgt == 1.0).astype(jnp.float32)

    # Fused 0.5*(pos1 + pos2 + cross1 + cross2); scalar reg added in wrapper.
    loss = 0.5 * ((pos + est) * nls + (1.0 - est) * nl1s
                  + (pos + sig) * nle + (1.0 - sig) * nl1e)
    loss_ref[...] = loss.astype(loss_ref.dtype)

    # Partial sums for the expected-positive regularizer.  Rows past
    # `valid_rows` (last partial grid block) hold stale VMEM and must be
    # masked out; when tb divides valid_rows every block is full -> no mask.
    if valid_rows % tb == 0:
        sig_v, est_v = sig, est
    else:
        rows = (lax.broadcasted_iota(jnp.int32, (tb, 1), 0)
                + pl.program_id(0) * tb)
        valid = rows < valid_rows
        sig_v = jnp.where(valid, sig, 0.0)
        est_v = jnp.where(valid, est, 0.0)
    ssum = jnp.sum(sig_v)
    esum = jnp.sum(est_v)

    # One combined (8, 128) side block per tile: sum(sig) at [0, 0],
    # sum(est) at [1, 0], zeros elsewhere -> single 4 KiB side DMA per tile
    # and a dense contiguous reduction in the wrapper (no strided gather).
    r8 = lax.broadcasted_iota(jnp.int32, (8, _LANES), 0)
    c8 = lax.broadcasted_iota(jnp.int32, (8, _LANES), 1)
    lane0 = c8 == 0
    part = jnp.where((r8 == 0) & lane0, ssum,
                     jnp.where((r8 == 1) & lane0, esum, 0.0))
    part_ref[0] = part


def _run_tiles(x2, e2, t2, *, target_rows):
    """Tile (R, L) arrays along rows and run the ROLE kernel."""
    R, L = x2.shape
    in_bytes = (jnp.dtype(x2.dtype).itemsize + jnp.dtype(e2.dtype).itemsize
                + jnp.dtype(t2.dtype).itemsize)
    per_row = L * (in_bytes + 4)          # 3 inputs (native dtype) + f32 loss
    tb_cap = max(8, (_STREAM_VMEM_BUDGET // (2 * per_row)) // 8 * 8)
    tb = max(8, min(int(target_rows), tb_cap, _round_up(R, 8)))
    # v7x megacore: prefer >= 2 independent tiles when there is enough work.
    if pl.cdiv(R, tb) < 2 and R > 8:
        tb = max(8, _round_up(pl.cdiv(R, 2), 8))
    num_tiles = pl.cdiv(R, tb)

    tile_spec = pl.BlockSpec((tb, L), lambda i: (i, 0))
    part_spec = pl.BlockSpec((1, 8, _LANES), lambda i: (i, 0, 0))

    kernel = functools.partial(_role_kernel, tb=tb, valid_rows=R)
    loss, part = pl.pallas_call(
        kernel,
        grid=(num_tiles,),
        in_specs=[tile_spec, tile_spec, tile_spec],
        out_specs=(tile_spec, part_spec),
        out_shape=(
            jax.ShapeDtypeStruct((R, L), jnp.float32),
            jax.ShapeDtypeStruct((num_tiles, 8, _LANES), jnp.float32),
        ),
        compiler_params=pltpu.CompilerParams(
            dimension_semantics=("parallel",),
            vmem_limit_bytes=_VMEM_LIMIT_BYTES),
    )(x2, e2, t2)
    return loss, part


def role_loss_pallas(logits, estimated_labels, target, *, expected_num_pos=2.9,
                     reduce=None, size_average=None, block_rows=4096):
    """Pallas implementation of ROLE.forward (reduce=None -> (B, C) loss)."""
    B, C = target.shape
    N = B * C

    if C >= _LANES:
        # Direct (B, C) path: no wrapper-side flatten/pad/upcast copies; the
        # loss lands directly in (B, C) (epilogue is only the + reg add).
        loss_mtx, part = _run_tiles(logits, estimated_labels, target,
                                    target_rows=block_rows)
    else:
        # Tiny-C path: lane-dense (M, 128) slab keeps output stores full
        # 128-lane wide.  Pad values are neutral for the regularizer sums:
        # sigmoid(-1e9) == 0 exactly and est/target pad with 0.
        M = pl.cdiv(N, _LANES)
        n_pad = M * _LANES

        def _flat(a, pad_value):
            a = a.reshape(-1)
            if n_pad > N:
                a = jnp.pad(a, (0, n_pad - N), constant_values=pad_value)
            return a.reshape(M, _LANES)

        x2 = _flat(logits, -1e9)
        e2 = _flat(estimated_labels, 0.0)
        t2 = _flat(target, 0.0)
        loss2, part = _run_tiles(x2, e2, t2, target_rows=block_rows)
        loss_mtx = loss2.reshape(-1)[:N].reshape(B, C)

    # Global expected-positive regularizer from the per-tile partial sums.
    sum_sig = jnp.sum(part[:, 0, :])
    sum_est = jnp.sum(part[:, 1, :])
    k = jnp.float32(expected_num_pos)
    reg_1 = (sum_sig / B - k) ** 2 / (C * C)
    reg_2 = (sum_est / B - k) ** 2 / (C * C)
    reg_loss = 0.5 * (reg_1 + reg_2)

    if reduce:
        if size_average:
            return jnp.mean(loss_mtx) + reg_loss
        return jnp.sum(loss_mtx) + jnp.float32(N) * reg_loss
    return loss_mtx + reg_loss


# ----------------------------- verification -----------------------------

def _neg_log(x):
    return -jnp.log(x + LOG_EPSILON)


def role_loss_ref(logits, estimated_labels, target, *, expected_num_pos=2.9,
                  reduce=None, size_average=None):
    """Pure-JAX mirror of the PyTorch forward."""
    C = target.shape[1]
    sig = jax.nn.sigmoid(logits.astype(jnp.float32))
    est = estimated_labels.astype(jnp.float32)
    tgt = target.astype(jnp.float32)
    pos_mask = tgt == 1.0
    pos1 = jnp.where(pos_mask, _neg_log(sig), 0.0)
    pos2 = jnp.where(pos_mask, _neg_log(est), 0.0)
    cross1 = est * _neg_log(sig) + (1.0 - est) * _neg_log(1.0 - sig)
    cross2 = sig * _neg_log(est) + (1.0 - sig) * _neg_log(1.0 - est)
    reg1 = (jnp.mean(jnp.sum(sig, axis=1)) - expected_num_pos) ** 2 / C ** 2
    reg2 = (jnp.mean(jnp.sum(est, axis=1)) - expected_num_pos) ** 2 / C ** 2
    loss = 0.5 * (pos1 + pos2) + 0.5 * (cross1 + cross2) + 0.5 * (reg1 + reg2)
    if reduce:
        return jnp.mean(loss) if size_average else jnp.sum(loss)
    return loss


if __name__ == "__main__":
    key = jax.random.PRNGKey(0)

    def make_inputs(k, B, C, dtype=jnp.float32):
        k1, k2, k3 = jax.random.split(k, 3)
        logits = jax.random.normal(k1, (B, C), dtype=jnp.float32).astype(dtype)
        est = jax.nn.sigmoid(
            jax.random.normal(k2, (B, C), dtype=jnp.float32)).astype(dtype)
        tgt = (jax.random.uniform(k3, (B, C)) > 0.5).astype(dtype)
        return logits, est, tgt

    k_a, k_b, k_c, k_d = jax.random.split(key, 4)

    # (8, 16): tiny-C lane-dense path, single tile.
    lo, es, tg = make_inputs(k_a, 8, 16)
    out = jax.block_until_ready(role_loss_pallas(lo, es, tg))
    ref = role_loss_ref(lo, es, tg)
    assert out.shape == (8, 16)
    assert jnp.allclose(out, ref, atol=1e-4, rtol=1e-5), "mismatch (8,16)"

    # (20, 130): direct ragged-C path, 2 tiles, masked partial last block.
    lo2, es2, tg2 = make_inputs(k_b, 20, 130)
    out2 = jax.block_until_ready(role_loss_pallas(lo2, es2, tg2))
    ref2 = role_loss_ref(lo2, es2, tg2)
    assert jnp.allclose(out2, ref2, atol=1e-4, rtol=1e-5), "mismatch (20,130)"

    # (6, 256): direct path with B < 8 (block overruns rows, masked sums).
    lo3, es3, tg3 = make_inputs(k_c, 6, 256)
    out3 = jax.block_until_ready(role_loss_pallas(lo3, es3, tg3))
    ref3 = role_loss_ref(lo3, es3, tg3)
    assert jnp.allclose(out3, ref3, atol=1e-4, rtol=1e-5), "mismatch (6,256)"

    # bf16 inputs stream at native width; math is still f32 inside the kernel.
    lo4, es4, tg4 = make_inputs(k_d, 16, 128, dtype=jnp.bfloat16)
    out4 = jax.block_until_ready(role_loss_pallas(lo4, es4, tg4))
    ref4 = role_loss_ref(lo4, es4, tg4)
    assert jnp.allclose(out4, ref4, atol=1e-3, rtol=1e-3), "mismatch bf16"

    # reduce / size_average branches.
    s = jax.block_until_ready(role_loss_pallas(lo, es, tg, reduce=True))
    s_ref = role_loss_ref(lo, es, tg, reduce=True)
    assert jnp.allclose(s, s_ref, atol=1e-3, rtol=1e-5), "mismatch reduce=sum"
    m = jax.block_until_ready(
        role_loss_pallas(lo, es, tg, reduce=True, size_average=True))
    m_ref = role_loss_ref(lo, es, tg, reduce=True, size_average=True)
    assert jnp.allclose(m, m_ref, atol=1e-4, rtol=1e-5), "mismatch reduce=mean"

    print("KERNEL_OK")
</pallas_src>

<mosaic_0001>
module attributes {stable_mosaic.version = 11 : i64} {
  func.func @_role_kernel(%arg0: i32, %arg1: memref<8x128xf32, #tpu.memory_space<vmem>>, %arg2: memref<8x128xf32, #tpu.memory_space<vmem>>, %arg3: memref<8x128xf32, #tpu.memory_space<vmem>>, %arg4: memref<8x128xf32, #tpu.memory_space<vmem>>, %arg5: memref<1x8x128xf32, #tpu.memory_space<vmem>>) attributes {dimension_semantics = [#tpu.dimension_semantics<parallel>], iteration_bounds = array<i64: 1>, scalar_prefetch = 0 : i64, scratch_operands = 0 : i64, tpu.core_type = #tpu.core_type<tc>, window_params = [{transform_indices = @transform_0, window_bounds = array<i64: 8, 128>}, {transform_indices = @transform_1, window_bounds = array<i64: 8, 128>}, {transform_indices = @transform_2, window_bounds = array<i64: 8, 128>}, {transform_indices = @transform_3, window_bounds = array<i64: 8, 128>}, {transform_indices = @transform_4, window_bounds = array<i64: 1, 8, 128>}]} {
    %c0 = arith.constant 0 : index
    %c0_0 = arith.constant 0 : index
    %0 = vector.load %arg1[%c0, %c0_0] : memref<8x128xf32, #tpu.memory_space<vmem>>, vector<8x128xf32>
    %c0_1 = arith.constant 0 : index
    %c0_2 = arith.constant 0 : index
    %1 = vector.load %arg2[%c0_1, %c0_2] : memref<8x128xf32, #tpu.memory_space<vmem>>, vector<8x128xf32>
    %c0_3 = arith.constant 0 : index
    %c0_4 = arith.constant 0 : index
    %2 = vector.load %arg3[%c0_3, %c0_4] : memref<8x128xf32, #tpu.memory_space<vmem>>, vector<8x128xf32>
    %3 = arith.negf %0 : vector<8x128xf32>
    %4 = math.exp %3 : vector<8x128xf32>
    %cst = arith.constant 1.000000e+00 : f32
    %5 = vector.broadcast %cst : f32 to vector<8x128xf32>
    %6 = arith.addf %5, %4 : vector<8x128xf32>
    %7 = arith.divf %5, %6 : vector<8x128xf32>
    %cst_5 = arith.constant 9.99999974E-6 : f32
    %8 = vector.broadcast %cst_5 : f32 to vector<8x128xf32>
    %9 = arith.addf %7, %8 : vector<8x128xf32>
    %10 = math.log %9 : vector<8x128xf32>
    %cst_6 = arith.constant 0.000000e+00 : f32
    %11 = vector.broadcast %cst_6 : f32 to vector<8x128xf32>
    %12 = arith.subf %11, %10 : vector<8x128xf32>
    %cst_7 = arith.constant 1.000000e+00 : f32
    %13 = vector.broadcast %cst_7 : f32 to vector<8x128xf32>
    %14 = arith.subf %13, %7 : vector<8x128xf32>
    %cst_8 = arith.constant 9.99999974E-6 : f32
    %15 = vector.broadcast %cst_8 : f32 to vector<8x128xf32>
    %16 = arith.addf %14, %15 : vector<8x128xf32>
    %17 = math.log %16 : vector<8x128xf32>
    %cst_9 = arith.constant 0.000000e+00 : f32
    %18 = vector.broadcast %cst_9 : f32 to vector<8x128xf32>
    %19 = arith.subf %18, %17 : vector<8x128xf32>
    %cst_10 = arith.constant 9.99999974E-6 : f32
    %20 = vector.broadcast %cst_10 : f32 to vector<8x128xf32>
    %21 = arith.addf %1, %20 : vector<8x128xf32>
    %22 = math.log %21 : vector<8x128xf32>
    %cst_11 = arith.constant 0.000000e+00 : f32
    %23 = vector.broadcast %cst_11 : f32 to vector<8x128xf32>
    %24 = arith.subf %23, %22 : vector<8x128xf32>
    %cst_12 = arith.constant 1.000000e+00 : f32
    %25 = vector.broadcast %cst_12 : f32 to vector<8x128xf32>
    %26 = arith.subf %25, %1 : vector<8x128xf32>
    %cst_13 = arith.constant 9.99999974E-6 : f32
    %27 = vector.broadcast %cst_13 : f32 to vector<8x128xf32>
    %28 = arith.addf %26, %27 : vector<8x128xf32>
    %29 = math.log %28 : vector<8x128xf32>
    %cst_14 = arith.constant 0.000000e+00 : f32
    %30 = vector.broadcast %cst_14 : f32 to vector<8x128xf32>
    %31 = arith.subf %30, %29 : vector<8x128xf32>
    %cst_15 = arith.constant 1.000000e+00 : f32
    %32 = vector.broadcast %cst_15 : f32 to vector<8x128xf32>
    %33 = arith.cmpf oeq, %2, %32 : vector<8x128xf32>
    %34 = arith.extui %33 : vector<8x128xi1> to vector<8x128xi32>
    %35 = arith.sitofp %34 : vector<8x128xi32> to vector<8x128xf32>
    %36 = arith.addf %35, %1 : vector<8x128xf32>
    %37 = arith.mulf %36, %12 : vector<8x128xf32>
    %cst_16 = arith.constant 1.000000e+00 : f32
    %38 = vector.broadcast %cst_16 : f32 to vector<8x128xf32>
    %39 = arith.subf %38, %1 : vector<8x128xf32>
    %40 = arith.mulf %39, %19 : vector<8x128xf32>
    %41 = arith.addf %37, %40 : vector<8x128xf32>
    %42 = arith.addf %35, %7 : vector<8x128xf32>
    %43 = arith.mulf %42, %24 : vector<8x128xf32>
    %44 = arith.addf %41, %43 : vector<8x128xf32>
    %cst_17 = arith.constant 1.000000e+00 : f32
    %45 = vector.broadcast %cst_17 : f32 to vector<8x128xf32>
    %46 = arith.subf %45, %7 : vector<8x128xf32>
    %47 = arith.mulf %46, %31 : vector<8x128xf32>
    %48 = arith.addf %44, %47 : vector<8x128xf32>
    %cst_18 = arith.constant 5.000000e-01 : f32
    %49 = vector.broadcast %cst_18 : f32 to vector<8x128xf32>
    %50 = arith.mulf %49, %48 : vector<8x128xf32>
    %c0_19 = arith.constant 0 : index
    %c0_20 = arith.constant 0 : index
    %51 = vector.load %arg4[%c0_19, %c0_20] : memref<8x128xf32, #tpu.memory_space<vmem>>, vector<8x128xf32>
    tpu.vector_store %arg4[%c0_19, %c0_20], %50 {strides = array<i32>} : memref<8x128xf32, #tpu.memory_space<vmem>>, vector<8x128xf32>,
    %52 = tpu.iota {dimensions = array<i32: 0>} : vector<8x1xi32>
    %c8_i32 = arith.constant 8 : i32
    %53 = arith.muli %arg0, %c8_i32 : i32
    %54 = vector.broadcast %53 : i32 to vector<8x1xi32>
    %55 = arith.addi %52, %54 : vector<8x1xi32>
    %c1_i32 = arith.constant 1 : i32
    %56 = vector.broadcast %c1_i32 : i32 to vector<8x1xi32>
    %57 = arith.cmpi slt, %55, %56 : vector<8x1xi32>
    %cst_21 = arith.constant 0.000000e+00 : f32
    %58 = vector.shape_cast %57 : vector<8x1xi1> to vector<8x1xi1>
    %59 = vector.broadcast %58 : vector<8x1xi1> to vector<8x128xi1>
    %60 = vector.broadcast %cst_21 : f32 to vector<8x128xf32>
    %61 = arith.select %59, %7, %60 : vector<8x128xi1>, vector<8x128xf32>
    %cst_22 = arith.constant 0.000000e+00 : f32
    %62 = vector.shape_cast %57 : vector<8x1xi1> to vector<8x1xi1>
    %63 = vector.broadcast %62 : vector<8x1xi1> to vector<8x128xi1>
    %64 = vector.broadcast %cst_22 : f32 to vector<8x128xf32>
    %65 = arith.select %63, %1, %64 : vector<8x128xi1>, vector<8x128xf32>
    %66 = vector.shape_cast %61 : vector<8x128xf32> to vector<1x8x128xf32>
    %cst_23 = arith.constant dense<0.000000e+00> : vector<1xf32>
    %67 = vector.multi_reduction <add>, %66, %cst_23 [1, 2] : vector<1x8x128xf32> to vector<1xf32>
    %68 = vector.shape_cast %67 : vector<1xf32> to vector<1x1x1xf32>
    %69 = vector.extract %68[0, 0, 0] : f32 from vector<1x1x1xf32>
    %70 = vector.shape_cast %65 : vector<8x128xf32> to vector<1x8x128xf32>
    %cst_24 = arith.constant dense<0.000000e+00> : vector<1xf32>
    %71 = vector.multi_reduction <add>, %70, %cst_24 [1, 2] : vector<1x8x128xf32> to vector<1xf32>
    %72 = vector.shape_cast %71 : vector<1xf32> to vector<1x1x1xf32>
    %73 = vector.extract %72[0, 0, 0] : f32 from vector<1x1x1xf32>
    %74 = tpu.iota {dimensions = array<i32: 0>} : vector<8x128xi32>
    %75 = tpu.iota {dimensions = array<i32: 1>} : vector<8x128xi32>
    %c0_i32 = arith.constant 0 : i32
    %76 = vector.broadcast %c0_i32 : i32 to vector<8x128xi32>
    %77 = arith.cmpi eq, %75, %76 : vector<8x128xi32>
    %c0_i32_25 = arith.constant 0 : i32
    %78 = vector.broadcast %c0_i32_25 : i32 to vector<8x128xi32>
    %79 = arith.cmpi eq, %74, %78 : vector<8x128xi32>
    %80 = arith.andi %79, %77 : vector<8x128xi1>
    %c1_i32_26 = arith.constant 1 : i32
    %81 = vector.broadcast %c1_i32_26 : i32 to vector<8x128xi32>
    %82 = arith.cmpi eq, %74, %81 : vector<8x128xi32>
    %83 = arith.andi %82, %77 : vector<8x128xi1>
    %cst_27 = arith.constant 0.000000e+00 : f32
    %84 = vector.broadcast %73 : f32 to vector<8x128xf32>
    %85 = vector.broadcast %cst_27 : f32 to vector<8x128xf32>
    %86 = arith.select %83, %84, %85 : vector<8x128xi1>, vector<8x128xf32>
    %87 = vector.broadcast %69 : f32 to vector<8x128xf32>
    %88 = arith.select %80, %87, %86 : vector<8x128xi1>, vector<8x128xf32>
    %c0_28 = arith.constant 0 : index
    %c0_29 = arith.constant 0 : index
    %c0_30 = arith.constant 0 : index
    %89 = vector.load %arg5[%c0_28, %c0_29, %c0_30] : memref<1x8x128xf32, #tpu.memory_space<vmem>>, vector<1x8x128xf32>
    %90 = vector.shape_cast %89 : vector<1x8x128xf32> to vector<8x128xf32>
    %91 = vector.shape_cast %88 : vector<8x128xf32> to vector<1x8x128xf32>
    tpu.vector_store %arg5[%c0_28, %c0_29, %c0_30], %91 {strides = array<i32>} : memref<1x8x128xf32, #tpu.memory_space<vmem>>, vector<1x8x128xf32>,
    return
  }
  func.func @transform_0(%arg0: i32) -> (i32, i32) {
    %c0_i32 = arith.constant 0 : i32
    %c0_i32_0 = arith.constant 0 : i32
    return %arg0, %c0_i32 : i32, i32
  }
  func.func @transform_1(%arg0: i32) -> (i32, i32) {
    %c0_i32 = arith.constant 0 : i32
    %c0_i32_0 = arith.constant 0 : i32
    return %arg0, %c0_i32 : i32, i32
  }
  func.func @transform_2(%arg0: i32) -> (i32, i32) {
    %c0_i32 = arith.constant 0 : i32
    %c0_i32_0 = arith.constant 0 : i32
    return %arg0, %c0_i32 : i32, i32
  }
  func.func @transform_3(%arg0: i32) -> (i32, i32) {
    %c0_i32 = arith.constant 0 : i32
    %c0_i32_0 = arith.constant 0 : i32
    return %arg0, %c0_i32 : i32, i32
  }
  func.func @transform_4(%arg0: i32) -> (i32, i32, i32) {
    %c0_i32 = arith.constant 0 : i32
    %c0_i32_0 = arith.constant 0 : i32
    %c0_i32_1 = arith.constant 0 : i32
    return %arg0, %c0_i32, %c0_i32_0 : i32, i32, i32
  }
}

</mosaic_0001>

<bundles_post_ra>
// kernel: tpu_custom_call.1
= control target key start
LH: loop header
LB: loop body
LE: loop exit
PB: predicated region body
PF: predicated region fallthrough
CT: control target
= control target key end

     0   :  { %10 = vsyncpa [#allocation3], 0  ;;  %s376_s0 = inlined_call_operand.hbm [shape: f32[1,128], index: 0, kind: input, shape index: {}]   ;;  %s377_s1 = inlined_call_operand.hbm [shape: f32[1,128], index: 1, kind: input, shape index: {}]   ;;  %s378_s2 = inlined_call_operand.vmem [shape: f32[1,128], index: 2, kind: input, shape index: {}]   ;;  %s379_s3 = inlined_call_operand.hbm [shape: f32[1,128], index: 3, kind: output, shape index: {0}]   ;;  %s380_s4 = inlined_call_operand.hbm [shape: f32[1,8,128], index: 4, kind: output, shape index: {1}]  }
   0x1   :  { %11 = vsyncpa [#allocation6], 0 }
   0x2   :  { %12 = vsyncpa [#allocation4], 0 }
   0x3   :  { %13 = vsyncpa [#allocation9], 0 }
   0x4   :  { %17 = vsyncadd [#allocation3], 112  ;;  %s18_s17 = sshll.u32 %s376_s0, 4  ;;  %s309_s18 = smov [#allocation2]   ;;  %s19_s17 = int_to_ptr.hbm [resolvable:$true] %s18_s17 }
   0x5   :  { %s20_s19 = sshll.u32 %s309_s18, 4  ;;  %s310_s20 = smov 16   ;;  %s21_s19 = int_to_ptr.vmem [resolvable:$true] %s20_s19 }
   0x6   :  { %s311_s21 = smov 1  }
   0x7   :  { %26 = dma.hbm_to_vmem [thread:$0]  %s19_s17, 16, %s21_s19, [#allocation3], %s310_s20, %s310_s20, %s311_s21  }
   0x8   :  { %30 = vsyncadd [#allocation6], 112  ;;  %s31_s24 = sshll.u32 %s377_s1, 4  ;;  %s312_s25 = smov [#allocation5]   ;;  %s32_s24 = int_to_ptr.hbm [resolvable:$true] %s31_s24 }
   0x9   :  { %s33_s26 = sshll.u32 %s312_s25, 4  ;;  %s34_s26 = int_to_ptr.vmem [resolvable:$true] %s33_s26 }
   0xa   :  { %39 = dma.hbm_to_vmem [thread:$0]  %s32_s24, 16, %s34_s26, [#allocation6], %s310_s20, %s310_s20, %s311_s21  }
   0xb   :  { %301 = dma.done.wait [#allocation3], 128  }
   0xc   :  { %302 = vsyncadd [#allocation3], 4294967168 }
   0xd   :  { %303 = dma.done.wait [#allocation6], 128  }
   0xe   :  { %304 = vsyncadd [#allocation6], 4294967168  ;;  %v50_v0 = vld [vmem:[#allocation2] sm:$0xff]  ;;  %v104_v5 = vlaneseq  ;;  %v51_v7 = vld [vmem:[#allocation5] sm:$0xff]  ;;  %v313_v27 = vmov 0.0  }
   0xf   :  { %v180_v1 = vmul.f32 -1.442695, %v50_v0  ;;  %v85_v9 = vsub.f32 1.0, %v51_v7  ;;  %v81_v14 = vadd.f32 1e-05, %v51_v7  ;;  %v52_v20 = vld [vmem:[%s378_s2] sm:$0xff] }
  0x10   :  { %v354_v12 = vshrl.u32 %v104_v5, 7  ;;  %vm90_vm5 = vcmp.eq.f32.partialorder %v52_v20, 1.0  ;;  %v133_v0 = vand.u32 127, %v104_v5 }
  0x11   :  { %193 = vpow2.f32 %v180_v1  ;;  %v86_v17 = vadd.f32 1e-05, %v85_v9  ;;  %v181_v28 = vsel %vm90_vm5, 1.0, %v313_v27 }
  0x12   :  { %vm109_vm4 = vcmp.lt.s32.totalorder %v354_v12, 1  ;;  %v93_v34 = vadd.f32 %v181_v28, %v51_v7  ;;  %vm134_vm6 = vcmp.eq.s32.totalorder %v133_v0, 0  ;;  %vm137_vm7 = vcmp.eq.s32.totalorder %v354_v12, 1 }
  0x13   :  { %v113_v29 = vsel %vm109_vm4, %v51_v7, 0.0  ;;  %vm135_vm8 = vcmp.eq.s32.totalorder %v354_v12, 0  ;;  %vm138_vm9 = vmand %vm137_vm7, %vm134_vm6 }
  0x14   :  { %vm136_vm10 = vmand %vm135_vm8, %vm134_vm6 }
  0x17   :  { %v194_v2 = vpop.eup %193 }
  0x18   :  { %v56_v3 = vadd.f32 1.0, %v194_v2 }
  0x1a   :  { %195 = vrcp.f32 %v56_v3  ;;  %v68_v8 = vand.u32 2147483648, %v56_v3  ;;  %vm62_vm0 = vweird.f32 %v56_v3  ;;  %v66_v11 = vand.u32 2147483647, %v56_v3 }
  0x1b   :  { %197 = vlog2.f32 %v81_v14 }
  0x1c   :  { %v69_v15 = vor.u32 1.1754944e-38, %v68_v8  ;;  %vm67_vm3 = vcmp.eq.f32.partialorder %v66_v11, 8.507059e+37  ;;  %199 = vlog2.f32 %v86_v17 }
  0x20   :  { %v196_v4 = vpop.eup %195 }
  0x21   :  { %v58_v6 = vmul.f32 %v196_v4, %v56_v3  ;;  %vm63_vm1 = vweird.f32 %v196_v4  ;;  %v198_v25 = vpop.eup %197 }
  0x22   :  { %vm64_vm2 = vmor %vm62_vm0, %vm63_vm1  ;;  %v200_v26 = vpop.eup %199  ;;  %v83_v30 = vmul.f32 0.6931472, %v198_v25 }
  0x23   :  { %v59_v10 = vsub.f32 1.0, %v58_v6  ;;  %v88_v33 = vmul.f32 0.6931472, %v200_v26 }
  0x24   :  { %v84_v39 = vsub.f32 0.0, %v83_v30 }
  0x25   :  { %v60_v13 = vmul.f32 %v196_v4, %v59_v10  ;;  %v89_v40 = vsub.f32 0.0, %v88_v33 }
  0x27   :  { %v61_v16 = vadd.f32 %v196_v4, %v60_v13 }
  0x29   :  { %v65_v18 = vsel %vm64_vm2, %v196_v4, %v61_v16 }
  0x2a   :  { %v70_v19 = vsel %vm67_vm3, %v69_v15, %v65_v18 }
  0x2b   :  { %v112_v21 = vsel %vm109_vm4, %v70_v19, 0.0  ;;  %v72_v22 = vadd.f32 1e-05, %v70_v19  ;;  %v76_v23 = vsub.f32 1.0, %v70_v19  ;;  %v97_v38 = vadd.f32 %v181_v28, %v70_v19 }
  0x2c   :  { %114 = vadd.xlane.f32.xlu0 %v112_v21 }
  0x2d   :  { %201 = vlog2.f32 %v72_v22  ;;  %v77_v24 = vadd.f32 1e-05, %v76_v23  ;;  %v98_v44 = vmul.f32 %v97_v38, %v84_v39  ;;  %v100_v46 = vmul.f32 %v89_v40, %v76_v23 }
  0x2f   :  { %203 = vlog2.f32 %v77_v24 }
  0x33   :  { %v202_v31 = vpop.eup %201 }
  0x34   :  { %v74_v32 = vmul.f32 0.6931472, %v202_v31  ;;  %123 = vadd.xlane.f32.xlu0 %v113_v29 }
  0x35   :  { %v204_v35 = vpop.eup %203 }
  0x36   :  { %v75_v36 = vsub.f32 0.0, %v74_v32  ;;  %v79_v37 = vmul.f32 0.6931472, %v204_v35 }
  0x38   :  { %v80_v41 = vsub.f32 0.0, %v79_v37  ;;  %v94_v42 = vmul.f32 %v93_v34, %v75_v36 }
  0x3a   :  { %v95_v43 = vmul.f32 %v85_v9, %v80_v41 }
  0x3c   :  { %v96_v45 = vadd.f32 %v95_v43, %v94_v42 }
  0x3e   :  { %v99_v47 = vadd.f32 %v98_v44, %v96_v45 }
  0x40   :  { %v101_v48 = vadd.f32 %v100_v46, %v99_v47 }
  0x42   :  { %v102_v49 = vmul.f32 0.5, %v101_v48 }
  0x44   :  { %103 = vst [vmem:[#allocation7] sm:$0xff] %v102_v49 }
  0x9f   :  { %v115_v50 = vpop.xlane.xlu0 %114 }
  0xa0   :  { %v116_v51 = vrot.slane %v115_v50, 4 }
  0xa2   :  { %v117_v52 = vadd.f32 %v116_v51, %v115_v50 }
  0xa4   :  { %v118_v53 = vrot.slane %v117_v52, 2 }
  0xa6   :  { %v119_v54 = vadd.f32 %v118_v53, %v117_v52 }
  0xa7   :  { %v124_v55 = vpop.xlane.xlu0 %123 }
  0xa8   :  { %v125_v56 = vrot.slane %v124_v55, 4  ;;  %v120_v57 = vrot.slane %v119_v54, 1 }
  0xaa   :  { %v126_v58 = vadd.f32 %v125_v56, %v124_v55  ;;  %v121_v59 = vadd.f32 %v120_v57, %v119_v54 }
  0xac   :  { %v127_v60 = vrot.slane %v126_v58, 2  ;;  %182 = vpush %v121_v59 }
  0xae   :  { %v128_v61 = vadd.f32 %v127_v60, %v126_v58 }
  0xb0   :  { %v129_v62 = vrot.slane %v128_v61, 1 }
  0xb2   :  { %v130_v63 = vadd.f32 %v129_v62, %v128_v61 }
  0xb4   :  { %184 = vpush %v130_v63 }
  0xdd   :  { %s183_s2 = spop %182 }
  0xde   :  { %v141_v2 = vstv %s183_s2 }
  0xe5   :  { %s185_s27 = spop %184 }
  0xe6   :  { %v139_v1 = vstv %s185_s27 }
  0xe7   :  { %v140_v3 = vsel %vm138_vm9, %v139_v1, 0.0 }
  0xe8   :  { %v142_v4 = vsel %vm136_vm10, %v141_v2, %v140_v3 }
  0xe9   :  { %143 = vst [vmem:[#allocation8] sm:$0xff] %v142_v4 }
  0xea   :  { %147 = vsyncadd [#allocation4], 112  ;;  %s150_s30 = sshll.u32 %s379_s3, 4  ;;  %s314_s5 = smov [#allocation7]   ;;  %s151_s30 = int_to_ptr.hbm [resolvable:$true] %s150_s30 }
  0xeb   :  { %s148_s6 = sshll.u32 %s314_s5, 4  ;;  %s315_s7 = smov [#allocation8]   ;;  %s149_s6 = int_to_ptr.vmem [resolvable:$true] %s148_s6 }
  0xec   :  { %156 = dma.vmem_to_hbm [thread:$0]  %s149_s6, 16, %s151_s30, [#allocation4], %s310_s20, %s310_s20, %s311_s21  }
  0xed   :  { %s162_s8 = sshll.u32 %s315_s7, 4  ;;  %s164_s11 = sshll.u32 %s380_s4, 4  ;;  %s163_s8 = int_to_ptr.vmem [resolvable:$true] %s162_s8  ;;  %s165_s11 = int_to_ptr.hbm [resolvable:$true] %s164_s11 }
  0xee   :  { %167 = dma.vmem_to_hbm [thread:$0]  %s163_s8, 128, %s165_s11, [#allocation9]  }
  0xef   :  { %305 = dma.done.wait [#allocation4], 128  }
  0xf0   :  { %306 = vsyncadd [#allocation4], 4294967168 }
  0xf1   :  { %307 = dma.done.wait [#allocation9], 128  }
  0xf2   :  { %308 = vsyncadd [#allocation9], 4294967168 }
  0xf3   :  { %176 = vsyncpa [#allocation3], 1 }
  0xf4   :  { %177 = vsyncpa [#allocation6], 1 }
  0xf5   :  { %178 = vsyncpa [#allocation4], 1 }
  0xf6   :  { %179 = vsyncpa [#allocation9], 1 }

</bundles_post_ra>
